<compile_context>
chip_gen: v7x
topology: tpu7x:2x2x1
jax: 0.10.0
libtpu: 0.0.40
codegen_flags: <defaults>
</compile_context>

<pallas_src>
import functools

import jax
import jax.numpy as jnp
from jax import lax
from jax.experimental import pallas as pl
from jax.experimental.pallas import tpu as pltpu


# ----------------------------------------------------------------------------
# Fused matmul (+ bias, optional ReLU) kernel: conv GEMMs and FC layers
# ----------------------------------------------------------------------------
def _fused_matmul_kernel(a_ref, w_ref, b_ref, o_ref, *, relu):
    acc = jnp.dot(a_ref[...], w_ref[...], preferred_element_type=jnp.float32)
    acc = acc + b_ref[...]
    if relu:
        acc = jnp.maximum(acc, 0.0)
    o_ref[...] = acc.astype(o_ref.dtype)


def fused_matmul(a, w, bias, *, relu):
    """out = maybe_relu(a @ w + bias).  a:(M,K) w:(K,N) bias:(1,N)."""
    M, K = a.shape
    _, N = w.shape
    TM = M
    for t in (512, 256, 128):           # biggest M tile that divides M (fewer grid steps)
        if M % t == 0:
            TM = t
            break
    return pl.pallas_call(
        functools.partial(_fused_matmul_kernel, relu=relu),
        out_shape=jax.ShapeDtypeStruct((M, N), jnp.float32),
        grid_spec=pltpu.PrefetchScalarGridSpec(
            num_scalar_prefetch=0,
            grid=(M // TM,),
            in_specs=[
                pl.BlockSpec((TM, K), lambda i: (i, 0)),
                pl.BlockSpec((K, N), lambda i: (0, 0)),
                pl.BlockSpec((1, N), lambda i: (0, 0)),
            ],
            out_specs=pl.BlockSpec((TM, N), lambda i: (i, 0)),
        ),
        compiler_params=pltpu.CompilerParams(dimension_semantics=("parallel",)),
    )(a, w, bias)


# ----------------------------------------------------------------------------
# 3x3 conv (stride 1, pad 1, no bias) + ReLU  via im2col + fused GEMM
# ----------------------------------------------------------------------------
def _im2col(x_nhwc, ksize=3, pad=1):
    N, H, W, C = x_nhwc.shape
    xp = jnp.pad(x_nhwc, ((0, 0), (pad, pad), (pad, pad), (0, 0)))
    cols = [xp[:, dy:dy + H, dx:dx + W, :]
            for dy in range(ksize) for dx in range(ksize)]
    patches = jnp.concatenate(cols, axis=-1)            # (N, H, W, k*k*C)
    return patches.reshape(N * H * W, ksize * ksize * C)


def conv3x3_relu(x_nhwc, w_hwio):
    """w_hwio: (3, 3, Cin, Cout) — same math as torch Conv2d(Cin,Cout,3,1,1,bias=False)."""
    N, H, W, Cin = x_nhwc.shape
    Cout = w_hwio.shape[-1]
    patches = _im2col(x_nhwc)                           # (N*H*W, 9*Cin)
    wmat = w_hwio.reshape(3 * 3 * Cin, Cout)            # matches im2col column order
    zero_bias = jnp.zeros((1, Cout), jnp.float32)
    out = fused_matmul(patches, wmat, zero_bias, relu=True)
    return out.reshape(N, H, W, Cout)


# ----------------------------------------------------------------------------
# 2x2 max pooling: single gridded kernel.  Vertical pairs via plain integer row
# indexing; horizontal down-select via two tiny 0/1 selection matmuls (MXU).
# No strided slices anywhere (works in compiled Mosaic AND interpret mode).
# ----------------------------------------------------------------------------
def _maxpool_kernel(x_ref, sa_ref, sb_ref, o_ref, *, Ho):
    sa = sa_ref[...]                                     # (Wo, W): picks even columns
    sb = sb_ref[...]                                     # (Wo, W): picks odd columns
    for i in range(Ho):                                  # static unroll (Ho <= 16)
        v = jnp.maximum(x_ref[0, 2 * i], x_ref[0, 2 * i + 1])        # (W, C) vertical max
        even = jnp.dot(sa, v, preferred_element_type=jnp.float32)    # (Wo, C)
        odd = jnp.dot(sb, v, preferred_element_type=jnp.float32)     # (Wo, C)
        o_ref[0, i] = jnp.maximum(even, odd)


def maxpool2x2(x_nhwc):
    N, H, W, C = x_nhwc.shape
    Ho, Wo = H // 2, W // 2
    rows = jnp.arange(Wo)[:, None]
    cols = jnp.arange(W)[None, :]
    sel_a = (cols == 2 * rows).astype(jnp.float32)       # (Wo, W)
    sel_b = (cols == 2 * rows + 1).astype(jnp.float32)   # (Wo, W)
    return pl.pallas_call(
        functools.partial(_maxpool_kernel, Ho=Ho),
        out_shape=jax.ShapeDtypeStruct((N, Ho, Wo, C), jnp.float32),
        grid_spec=pltpu.PrefetchScalarGridSpec(
            num_scalar_prefetch=0,
            grid=(N,),
            in_specs=[
                pl.BlockSpec((1, H, W, C), lambda n: (n, 0, 0, 0)),
                pl.BlockSpec((Wo, W), lambda n: (0, 0)),
                pl.BlockSpec((Wo, W), lambda n: (0, 0)),
            ],
            out_specs=pl.BlockSpec((1, Ho, Wo, C), lambda n: (n, 0, 0, 0)),
        ),
        compiler_params=pltpu.CompilerParams(dimension_semantics=("parallel",)),
    )(x_nhwc, sel_a, sel_b)


# ----------------------------------------------------------------------------
# affine_grid + grid_sample (bilinear, zeros padding, align_corners=False)
# Single combined weight matrix, one transposed MXU matmul, lane-dense output.
# ----------------------------------------------------------------------------
def _grid_sample_kernel(theta_ref, img_ref, o_ref, *, H, W, TP):
    pblk = pl.program_id(1)
    t = theta_ref[0]                                      # (1, 6) VMEM block
    t0 = t[:, 0:1]; t1 = t[:, 1:2]; t2 = t[:, 2:3]        # each (1, 1)
    t3 = t[:, 3:4]; t4 = t[:, 4:5]; t5 = t[:, 5:6]

    # Output pixel indices handled by this tile, as a (1, TP) lane vector.
    p = pblk * TP + lax.broadcasted_iota(jnp.int32, (1, TP), 1)
    i_row = p // W
    j_col = p - i_row * W

    # PyTorch affine_grid base grid (align_corners=False).
    xb = (2.0 * j_col.astype(jnp.float32) + 1.0) / float(W) - 1.0
    yb = (2.0 * i_row.astype(jnp.float32) + 1.0) / float(H) - 1.0
    gx = t0 * xb + t1 * yb + t2                           # (1, TP)
    gy = t3 * xb + t4 * yb + t5

    # Un-normalize (align_corners=False) and split into corner indices / weights.
    ix = ((gx + 1.0) * float(W) - 1.0) * 0.5
    iy = ((gy + 1.0) * float(H) - 1.0) * 0.5
    x0f = jnp.floor(ix)
    y0f = jnp.floor(iy)
    fx = ix - x0f
    fy = iy - y0f
    x0 = x0f.astype(jnp.int32)
    y0 = y0f.astype(jnp.int32)
    x1 = x0 + 1
    y1 = y0 + 1

    # Per-axis corner weights; zeros padding_mode = zero weight when out of bounds.
    wx0 = jnp.where((x0 >= 0) & (x0 < W), 1.0 - fx, 0.0)
    wx1 = jnp.where((x1 >= 0) & (x1 < W), fx, 0.0)
    wy0 = jnp.where((y0 >= 0) & (y0 < H), 1.0 - fy, 0.0)
    wy1 = jnp.where((y1 >= 0) & (y1 < H), fy, 0.0)

    # Bilinear interpolation is separable: combined gather weights
    #   S[q, p] = (wy0*[yq==y0] + wy1*[yq==y1]) * (wx0*[xq==x0] + wx1*[xq==x1])
    q = lax.broadcasted_iota(jnp.int32, (H * W, 1), 0)    # (HW, 1) column
    yq = q // W
    xq = q - yq * W
    rowf = jnp.where(yq == y0, wy0, 0.0) + jnp.where(yq == y1, wy1, 0.0)   # (HW, TP)
    colf = jnp.where(xq == x0, wx0, 0.0) + jnp.where(xq == x1, wx1, 0.0)   # (HW, TP)
    s = rowf * colf                                       # (HW, TP)

    # Single MXU gather: (C, HW) @ (HW, TP) -> (C, TP); TP=256 lanes -> unmasked stores.
    o_ref[0] = jnp.dot(img_ref[0], s,
                       preferred_element_type=jnp.float32).astype(o_ref.dtype)


def affine_grid_sample(theta, imgs, H, W):
    """theta: (B, 6) f32; imgs: (B, C, H*W) f32 (channels-major) -> (B, C, H*W)."""
    B, C, HW = imgs.shape
    TP = 256 if HW % 256 == 0 else HW
    theta3 = theta.reshape(B, 1, 6)
    return pl.pallas_call(
        functools.partial(_grid_sample_kernel, H=H, W=W, TP=TP),
        out_shape=jax.ShapeDtypeStruct((B, C, HW), jnp.float32),
        grid_spec=pltpu.PrefetchScalarGridSpec(
            num_scalar_prefetch=0,
            grid=(B, HW // TP),
            in_specs=[
                pl.BlockSpec((1, 1, 6), lambda b, p: (b, 0, 0)),      # theta (per batch)
                pl.BlockSpec((1, C, HW), lambda b, p: (b, 0, 0)),     # image (C, HW)
            ],
            out_specs=pl.BlockSpec((1, C, TP), lambda b, p: (b, 0, p)),
        ),
        compiler_params=pltpu.CompilerParams(
            dimension_semantics=("parallel", "parallel"),
        ),
    )(theta3, imgs)


# ----------------------------------------------------------------------------
# Parameters (deterministic, synthetic) and full forward pass
# ----------------------------------------------------------------------------
def init_params(key, in_channels):
    ks = jax.random.split(key, 8)
    return dict(
        conv1_w=jax.random.normal(ks[0], (3, 3, in_channels, 32), jnp.float32) * 0.1,
        conv2_w=jax.random.normal(ks[1], (3, 3, 32, 32), jnp.float32) * 0.05,
        conv3_w=jax.random.normal(ks[2], (3, 3, 32, 32), jnp.float32) * 0.05,
        conv4_w=jax.random.normal(ks[3], (3, 3, 32, 32), jnp.float32) * 0.05,  # unused (as in torch forward)
        fc1_w=jax.random.normal(ks[4], (32 * 4 * 4, 1024), jnp.float32) * 0.02,
        fc1_b=jax.random.normal(ks[5], (1, 1024), jnp.float32) * 0.01,
        fc2_w=jax.random.normal(ks[6], (1024, 6), jnp.float32) * 0.001,
        fc2_b=jnp.array([[1.0, 0.0, 0.0, 0.0, 1.0, 0.0]], jnp.float32),  # near-identity warp
    )


def spatial_transformer_forward(params, x_nchw, clean_nchw):
    B, Cin, H, W = x_nchw.shape
    x = jnp.transpose(x_nchw, (0, 2, 3, 1)).astype(jnp.float32)       # NCHW -> NHWC

    # Localization net (matches torch forward; conv4 is never used there).
    a = conv3x3_relu(x, params["conv1_w"])
    a = conv3x3_relu(a, params["conv2_w"])
    a = maxpool2x2(a)
    a = conv3x3_relu(a, params["conv3_w"])
    a = maxpool2x2(a)
    a = conv3x3_relu(a, params["conv3_w"])          # conv3 applied twice, as in torch
    a = maxpool2x2(a)                               # (B, H/8, W/8, 32)

    # torch flattens NCHW-order -> replicate (B, 32*4*4) ordering exactly.
    flat = jnp.transpose(a, (0, 3, 1, 2)).reshape(B, 32 * (H // 8) * (W // 8))
    h = fused_matmul(flat, params["fc1_w"], params["fc1_b"], relu=False)
    theta = fused_matmul(h, params["fc2_w"], params["fc2_b"], relu=False)  # (B, 6) == (B, 2, 3)

    # Sampler works in channels-major layout so its output is already NCHW.
    imgs = jnp.concatenate([x_nchw, clean_nchw], axis=1).astype(jnp.float32)
    imgs = imgs.reshape(B, 2 * Cin, H * W)
    sampled = affine_grid_sample(theta, imgs, H, W)                    # (B, 2*Cin, H*W)
    rois = sampled[:, :Cin, :].reshape(B, Cin, H, W)
    transform_clean = sampled[:, Cin:, :].reshape(B, Cin, H, W)
    return rois, transform_clean


if __name__ == "__main__":
    key = jax.random.PRNGKey(0)
    k_p, k_x, k_c = jax.random.split(key, 3)
    # fc1 = Linear(32*4*4, ...) with three 2x2 pools implies a 32x32 input.
    B, Cin, H, W = 2, 4, 32, 32
    params = init_params(k_p, Cin)
    x = jax.random.normal(k_x, (B, Cin, H, W), jnp.float32)
    clean = jax.random.normal(k_c, (B, Cin, H, W), jnp.float32)

    rois, transform_clean = spatial_transformer_forward(params, x, clean)
    jax.block_until_ready((rois, transform_clean))
    assert rois.shape == (B, Cin, H, W)
    assert transform_clean.shape == (B, Cin, H, W)
    assert bool(jnp.all(jnp.isfinite(rois))) and bool(jnp.all(jnp.isfinite(transform_clean)))
    print("KERNEL_OK")
</pallas_src>

<mosaic_0001>
module attributes {stable_mosaic.version = 11 : i64} {
  func.func @_fused_matmul_kernel(%arg0: i32, %arg1: memref<512x36xf32, #tpu.memory_space<vmem>>, %arg2: memref<36x32xf32, #tpu.memory_space<vmem>>, %arg3: memref<1x32xf32, #tpu.memory_space<vmem>>, %arg4: memref<512x32xf32, #tpu.memory_space<vmem>>) attributes {dimension_semantics = [#tpu.dimension_semantics<parallel>], iteration_bounds = array<i64: 4>, scalar_prefetch = 0 : i64, scratch_operands = 0 : i64, tpu.core_type = #tpu.core_type<tc>, window_params = [{transform_indices = @transform_0, window_bounds = array<i64: 512, 36>}, {pipeline_mode = #tpu.pipeline_mode<synchronous>, transform_indices = @transform_1, window_bounds = array<i64: 36, 32>}, {pipeline_mode = #tpu.pipeline_mode<synchronous>, transform_indices = @transform_2, window_bounds = array<i64: 1, 32>}, {transform_indices = @transform_3, window_bounds = array<i64: 512, 32>}]} {
    %c0 = arith.constant 0 : index
    %c0_0 = arith.constant 0 : index
    %0 = vector.load %arg1[%c0, %c0_0] : memref<512x36xf32, #tpu.memory_space<vmem>>, vector<512x36xf32>
    %c0_1 = arith.constant 0 : index
    %c0_2 = arith.constant 0 : index
    %1 = vector.load %arg2[%c0_1, %c0_2] : memref<36x32xf32, #tpu.memory_space<vmem>>, vector<36x32xf32>
    %cst = arith.constant dense<0.000000e+00> : vector<512x32xf32>
    %2 = tpu.matmul %0, %1, %cst {dimension_numbers = #tpu.dot_dimension_numbers<[1], [0], [0], [1], [0, 0, 1, 1], [], []>} : vector<512x36xf32>, vector<36x32xf32>, vector<512x32xf32> -> vector<512x32xf32>
    %c0_3 = arith.constant 0 : index
    %c0_4 = arith.constant 0 : index
    %3 = vector.load %arg3[%c0_3, %c0_4] : memref<1x32xf32, #tpu.memory_space<vmem>>, vector<1x32xf32>
    %4 = vector.broadcast %3 : vector<1x32xf32> to vector<512x32xf32>
    %5 = arith.addf %2, %4 : vector<512x32xf32>
    %cst_5 = arith.constant 0.000000e+00 : f32
    %6 = vector.broadcast %cst_5 : f32 to vector<512x32xf32>
    %7 = arith.maximumf %5, %6 : vector<512x32xf32>
    %c0_6 = arith.constant 0 : index
    %c0_7 = arith.constant 0 : index
    %8 = vector.load %arg4[%c0_6, %c0_7] : memref<512x32xf32, #tpu.memory_space<vmem>>, vector<512x32xf32>
    tpu.vector_store %arg4[%c0_6, %c0_7], %7 {strides = array<i32>} : memref<512x32xf32, #tpu.memory_space<vmem>>, vector<512x32xf32>,
    return
  }
  func.func @transform_0(%arg0: i32) -> (i32, i32) {
    %c0_i32 = arith.constant 0 : i32
    %c0_i32_0 = arith.constant 0 : i32
    return %arg0, %c0_i32 : i32, i32
  }
  func.func @transform_1(%arg0: i32) -> (i32, i32) {
    %c0_i32 = arith.constant 0 : i32
    %c0_i32_0 = arith.constant 0 : i32
    %c0_i32_1 = arith.constant 0 : i32
    return %c0_i32, %c0_i32_0 : i32, i32
  }
  func.func @transform_2(%arg0: i32) -> (i32, i32) {
    %c0_i32 = arith.constant 0 : i32
    %c0_i32_0 = arith.constant 0 : i32
    %c0_i32_1 = arith.constant 0 : i32
    return %c0_i32, %c0_i32_0 : i32, i32
  }
  func.func @transform_3(%arg0: i32) -> (i32, i32) {
    %c0_i32 = arith.constant 0 : i32
    %c0_i32_0 = arith.constant 0 : i32
    return %arg0, %c0_i32 : i32, i32
  }
}

</mosaic_0001>

<bundles_post_ra>
// kernel: tpu_custom_call.1
= control target key start
LH: loop header
LB: loop body
LE: loop exit
PB: predicated region body
PF: predicated region fallthrough
CT: control target
= control target key end

     0   :  { %s1319_s12 = smov 0   ;;  %s1691_s0 = inlined_call_operand.vmem [shape: f32[2048,36], index: 0, kind: input, shape index: {}]   ;;  %s1692_s1 = inlined_call_operand.vmem [shape: f32[36,32], index: 1, kind: input, shape index: {}]   ;;  %s1693_s2 = inlined_call_operand.vmem [shape: f32[1,32], index: 2, kind: input, shape index: {}]   ;;  %s1694_s3 = inlined_call_operand.vmem [shape: f32[2048,32], index: 3, kind: output, shape index: {}]  }
   0x1 LB: > { %s1017_s13 = sadd.s32 4294967295, %s1297_s12   ;;  %p1021_p0 = scmp.ge.s32.totalorder %s1297_s12, 1  ;;  %s1297_s12 = sphi %s1319_s12, %s13_s12  }
   0x2   : > { %p138_p1 = scmp.lt.s32.totalorder %s1297_s12, 5 }
   0x4   : > { %p139_p2 = pnand %p1021_p0, %p138_p1 }
   0x5   : > { %v238_v0 = vld [vmem:[%s1692_s1] sm:$0xff] (!%p139_p2)  ;;  %v239_v1 = vld [vmem:[%s1692_s1 + $0x8] sm:$0xff] (!%p139_p2)  ;;  %v240_v2 = vld [vmem:[%s1692_s1 + $0x10] sm:$0xff] (!%p139_p2)  ;;  %s1022_s20 = sshll.u32 (!%p139_p2), %s1017_s13, 6  ;;  %vm443_vm0 = vcmask (!%p139_p2), 1043456   ;;  %vm250_vm1 = vcmask (!%p139_p2), 293888  }
   0x6   : > { %142 = sbr.rel (%p139_p2) target bundleno = 297 (0x129), region = 32  ;;  %v1269_v3 = vpack.c.bf16 (!%p139_p2), %v239_v1, %v238_v0  ;;  %v241_v4 = vld [vmem:[%s1692_s1 + $0x18] sm:$0xff] (!%p139_p2)  ;;  %p163_p3 = scmp.lt.s32.totalorder (!%p139_p2), %s1022_s20, 255  ;;  %v242_v6 = vld [vmem:[%s1692_s1 + $0x20] sm:$0xf] (!%p139_p2)  ;;  %vm896_vm2 = vcmask (!%p139_p2), 261120  }
   0x7   : > { %v1273_v5 = vpack.c.bf16 (!%p139_p2), %v241_v4, %v240_v2 }
   0x8   : > { %1270 = vmatprep.subr.bf16.mxu0 (!%p139_p2), %v1269_v3  ;;  %1277 = vmatprep.subr.bf16.mxu1 (!%p139_p2), %v1269_v3 }
   0x9   : > { %1272 = vmatpush3.bf16.msra.mxu0 (!%p139_p2), %v1269_v3  ;;  %1280 = vmatpush3.bf16.msra.mxu1 (!%p139_p2), %v1269_v3 }
   0xa   : > { %1274 = vmatprep.subr.bf16.mxu0 (!%p139_p2), %v1273_v5  ;;  %1278 = vmatprep.subr.bf16.mxu1 (!%p139_p2), %v1273_v5 }
   0xd   : > { %s1696_s20 = smov (!%p163_p3, %s1022_s20), 255  ;;  %1276 = vmatpush3.bf16.msra.mxu0 %v1273_v5  ;;  %1281 = vmatpush3.bf16.msra.mxu1 %v1273_v5 }
   0xe   : > { %s1023_s23 = sshll.u32 %s1696_s20, 3  ;;  %1171 = vmatprep.subr.msk.mxu0 %vm443_vm0, %v242_v6  ;;  %1279 = vmatprep.subr.msk.mxu1 %vm443_vm0, %v242_v6 }
   0xf   : > { %s1350_s28 = scalar_lea.vmem %s1691_s0, %s1023_s23  ;;  %s1496_s6 = scalar_lea.vmem %s1694_s3, %s1023_s23 }
  0x10   : > { %v174_v7 = vld [vmem:[%s1350_s28] sm:$0xff]  ;;  %v175_v9 = vld [vmem:[%s1350_s28 + $0x8] sm:$0xff]  ;;  %v176_v11 = vld [vmem:[%s1350_s28 + $0x10] sm:$0xff] }
  0x11   : > { %v206_v8 = vld [vmem:[%s1350_s28 + $0x100] sm:$0xff]  ;;  %1173 = vmatprep.mubr.msk.f32.mxu0 %vm250_vm1, %v174_v7  ;;  %v207_v10 = vld [vmem:[%s1350_s28 + $0x108] sm:$0xff]  ;;  %v208_v12 = vld [vmem:[%s1350_s28 + $0x110] sm:$0xff]  ;;  %1172 = vmatpush3.msk.msra.mxu0 %vm443_vm0, %v242_v6 }
  0x12   : > { %1221 = vmatprep.mubr.msk.f32.mxu1 %vm250_vm1, %v206_v8  ;;  %1282 = vmatpush3.msk.msra.mxu1 %vm443_vm0, %v242_v6  ;;  %v177_v13 = vld [vmem:[%s1350_s28 + $0x18] sm:$0xff]  ;;  %v178_v15 = vld [vmem:[%s1350_s28 + $0x20] sm:$0xff]  ;;  %v179_v17 = vld [vmem:[%s1350_s28 + $0x28] sm:$0xff] }
  0x13   : > { %1174 = vmatmul.mubr.msk.f32.vlgmr.msra.gmra.mrb[0].mxu0 %vm250_vm1, %v175_v9  ;;  %1222 = vmatmul.mubr.msk.f32.vlgmr.msra.gmra.mrb[0].mxu1 %vm250_vm1, %v207_v10  ;;  %v209_v14 = vld [vmem:[%s1350_s28 + $0x118] sm:$0xff]  ;;  %v210_v16 = vld [vmem:[%s1350_s28 + $0x120] sm:$0xff]  ;;  %v211_v18 = vld [vmem:[%s1350_s28 + $0x128] sm:$0xff] }
  0x14   : > { %1176 = vmatprep.mubr.msk.f32.mxu0 %vm250_vm1, %v176_v11  ;;  %1224 = vmatprep.mubr.msk.f32.mxu1 %vm250_vm1, %v208_v12  ;;  %v180_v19 = vld [vmem:[%s1350_s28 + $0x30] sm:$0xff]  ;;  %v181_v21 = vld [vmem:[%s1350_s28 + $0x38] sm:$0xff]  ;;  %v182_v23 = vld [vmem:[%s1350_s28 + $0x40] sm:$0xff] }
  0x15   : > { %v212_v20 = vld [vmem:[%s1350_s28 + $0x130] sm:$0xff]  ;;  %v213_v22 = vld [vmem:[%s1350_s28 + $0x138] sm:$0xff]  ;;  %v214_v24 = vld [vmem:[%s1350_s28 + $0x140] sm:$0xff] }
  0x16   : > { %v183_v25 = vld [vmem:[%s1350_s28 + $0x48] sm:$0xff]  ;;  %v184_v27 = vld [vmem:[%s1350_s28 + $0x50] sm:$0xff]  ;;  %v185_v29 = vld [vmem:[%s1350_s28 + $0x58] sm:$0xff] }
  0x17   : > { %1177 = vmatmul.mubr.msk.f32.gmra.mrb[2].mxu0 %vm250_vm1, %v177_v13  ;;  %1225 = vmatmul.mubr.msk.f32.gmra.mrb[2].mxu1 %vm250_vm1, %v209_v14  ;;  %v215_v26 = vld [vmem:[%s1350_s28 + $0x148] sm:$0xff]  ;;  %v216_v28 = vld [vmem:[%s1350_s28 + $0x150] sm:$0xff]  ;;  %v217_v30 = vld [vmem:[%s1350_s28 + $0x158] sm:$0xff] }
  0x18   : > { %1179 = vmatprep.mubr.msk.f32.mxu0 %vm250_vm1, %v178_v15  ;;  %1227 = vmatprep.mubr.msk.f32.mxu1 %vm250_vm1, %v210_v16  ;;  %v186_v31 = vld [vmem:[%s1350_s28 + $0x60] sm:$0xff]  ;;  %v187_v33 = vld [vmem:[%s1350_s28 + $0x68] sm:$0xff]  ;;  %v188_v35 = vld [vmem:[%s1350_s28 + $0x70] sm:$0xff] }
  0x19   : > { %v218_v32 = vld [vmem:[%s1350_s28 + $0x160] sm:$0xff]  ;;  %v219_v34 = vld [vmem:[%s1350_s28 + $0x168] sm:$0xff]  ;;  %v220_v36 = vld [vmem:[%s1350_s28 + $0x170] sm:$0xff] }
  0x1a   : > { %v189_v37 = vld [vmem:[%s1350_s28 + $0x78] sm:$0xff]  ;;  %v190_v39 = vld [vmem:[%s1350_s28 + $0x80] sm:$0xff]  ;;  %v191_v41 = vld [vmem:[%s1350_s28 + $0x88] sm:$0xff] }
  0x1b   : > { %1180 = vmatmul.mubr.msk.f32.gmra.mrb[4].mxu0 %vm250_vm1, %v179_v17  ;;  %1228 = vmatmul.mubr.msk.f32.gmra.mrb[4].mxu1 %vm250_vm1, %v211_v18  ;;  %v221_v38 = vld [vmem:[%s1350_s28 + $0x178] sm:$0xff]  ;;  %v222_v40 = vld [vmem:[%s1350_s28 + $0x180] sm:$0xff]  ;;  %v223_v42 = vld [vmem:[%s1350_s28 + $0x188] sm:$0xff] }
  0x1c   : > { %1182 = vmatprep.mubr.msk.f32.mxu0 %vm250_vm1, %v180_v19  ;;  %1230 = vmatprep.mubr.msk.f32.mxu1 %vm250_vm1, %v212_v20  ;;  %v192_v43 = vld [vmem:[%s1350_s28 + $0x90] sm:$0xff]  ;;  %v193_v45 = vld [vmem:[%s1350_s28 + $0x98] sm:$0xff]  ;;  %v194_v47 = vld [vmem:[%s1350_s28 + $0xa0] sm:$0xff] }
  0x1d   : > { %v224_v44 = vld [vmem:[%s1350_s28 + $0x190] sm:$0xff]  ;;  %v225_v46 = vld [vmem:[%s1350_s28 + $0x198] sm:$0xff]  ;;  %v226_v48 = vld [vmem:[%s1350_s28 + $0x1a0] sm:$0xff] }
  0x1e   : > { %v195_v49 = vld [vmem:[%s1350_s28 + $0xa8] sm:$0xff]  ;;  %v196_v51 = vld [vmem:[%s1350_s28 + $0xb0] sm:$0xff]  ;;  %v197_v53 = vld [vmem:[%s1350_s28 + $0xb8] sm:$0xff] }
  0x1f   : > { %1183 = vmatmul.mubr.msk.f32.gmra.mrb[6].mxu0 %vm250_vm1, %v181_v21  ;;  %1231 = vmatmul.mubr.msk.f32.gmra.mrb[6].mxu1 %vm250_vm1, %v213_v22  ;;  %v227_v50 = vld [vmem:[%s1350_s28 + $0x1a8] sm:$0xff]  ;;  %v228_v52 = vld [vmem:[%s1350_s28 + $0x1b0] sm:$0xff]  ;;  %v229_v54 = vld [vmem:[%s1350_s28 + $0x1b8] sm:$0xff] }
  0x20   : > { %1185 = vmatprep.mubr.msk.f32.mxu0 %vm250_vm1, %v182_v23  ;;  %1233 = vmatprep.mubr.msk.f32.mxu1 %vm250_vm1, %v214_v24  ;;  %v198_v55 = vld [vmem:[%s1350_s28 + $0xc0] sm:$0xff]  ;;  %v199_v57 = vld [vmem:[%s1350_s28 + $0xc8] sm:$0xff]  ;;  %v200_v59 = vld [vmem:[%s1350_s28 + $0xd0] sm:$0xff] }
  0x21   : > { %v230_v56 = vld [vmem:[%s1350_s28 + $0x1c0] sm:$0xff]  ;;  %v231_v58 = vld [vmem:[%s1350_s28 + $0x1c8] sm:$0xff]  ;;  %v232_v60 = vld [vmem:[%s1350_s28 + $0x1d0] sm:$0xff] }
  0x22   : > { %v201_v61 = vld [vmem:[%s1350_s28 + $0xd8] sm:$0xff]  ;;  %v202_v63 = vld [vmem:[%s1350_s28 + $0xe0] sm:$0xff]  ;;  %v203_v1 = vld [vmem:[%s1350_s28 + $0xe8] sm:$0xff] }
  0x23   : > { %1186 = vmatmul.mubr.msk.f32.gmra.mrb[8].mxu0 %vm250_vm1, %v183_v25  ;;  %1234 = vmatmul.mubr.msk.f32.gmra.mrb[8].mxu1 %vm250_vm1, %v215_v26  ;;  %v233_v62 = vld [vmem:[%s1350_s28 + $0x1d8] sm:$0xff]  ;;  %v234_v0 = vld [vmem:[%s1350_s28 + $0x1e0] sm:$0xff]  ;;  %v235_v2 = vld [vmem:[%s1350_s28 + $0x1e8] sm:$0xff] }
  0x24   : > { %1188 = vmatprep.mubr.msk.f32.mxu0 %vm250_vm1, %v184_v27  ;;  %1236 = vmatprep.mubr.msk.f32.mxu1 %vm250_vm1, %v216_v28  ;;  %v204_v3 = vld [vmem:[%s1350_s28 + $0xf0] sm:$0xff]  ;;  %v205_v5 = vld [vmem:[%s1350_s28 + $0xf8] sm:$0xff]  ;;  %v1487_v7 = vld [vmem:[%s1693_s2] ss:$0 sm:$0xff] }
  0x25   : > { %v236_v4 = vld [vmem:[%s1350_s28 + $0x1f0] sm:$0xff]  ;;  %v237_v6 = vld [vmem:[%s1350_s28 + $0x1f8] sm:$0xff] }
  0x27   : > { %1189 = vmatmul.mubr.msk.f32.gmra.mrb[10].mxu0 %vm250_vm1, %v185_v29  ;;  %1237 = vmatmul.mubr.msk.f32.gmra.mrb[10].mxu1 %vm250_vm1, %v217_v30 }
  0x28   : > { %1191 = vmatprep.mubr.msk.f32.mxu0 %vm250_vm1, %v186_v31  ;;  %1239 = vmatprep.mubr.msk.f32.mxu1 %vm250_vm1, %v218_v32 }
  0x2b   : > { %1192 = vmatmul.mubr.msk.f32.gmra.mrb[12].mxu0 %vm250_vm1, %v187_v33  ;;  %1240 = vmatmul.mubr.msk.f32.gmra.mrb[12].mxu1 %vm250_vm1, %v219_v34 }
  0x2c   : > { %1194 = vmatprep.mubr.msk.f32.mxu0 %vm250_vm1, %v188_v35  ;;  %1242 = vmatprep.mubr.msk.f32.mxu1 %vm250_vm1, %v220_v36 }
  0x2f   : > { %1195 = vmatmul.mubr.msk.f32.gmra.mrb[14].mxu0 %vm250_vm1, %v189_v37  ;;  %1243 = vmatmul.mubr.msk.f32.gmra.mrb[14].mxu1 %vm250_vm1, %v221_v38 }
  0x30   : > { %1197 = vmatprep.mubr.msk.f32.mxu0 %vm250_vm1, %v190_v39  ;;  %1245 = vmatprep.mubr.msk.f32.mxu1 %vm250_vm1, %v222_v40 }
  0x33   : > { %1198 = vmatmul.mubr.msk.f32.gmra.mrb[16].mxu0 %vm250_vm1, %v191_v41  ;;  %1246 = vmatmul.mubr.msk.f32.gmra.mrb[16].mxu1 %vm250_vm1, %v223_v42 }
  0x34   : > { %1200 = vmatprep.mubr.msk.f32.mxu0 %vm250_vm1, %v192_v43  ;;  %1248 = vmatprep.mubr.msk.f32.mxu1 %vm250_vm1, %v224_v44 }
  0x37   : > { %1201 = vmatmul.mubr.msk.f32.gmra.mrb[18].mxu0 %vm250_vm1, %v193_v45  ;;  %1249 = vmatmul.mubr.msk.f32.gmra.mrb[18].mxu1 %vm250_vm1, %v225_v46 }
  0x38   : > { %1203 = vmatprep.mubr.msk.f32.mxu0 %vm250_vm1, %v194_v47  ;;  %1251 = vmatprep.mubr.msk.f32.mxu1 %vm250_vm1, %v226_v48 }
  0x3b   : > { %1204 = vmatmul.mubr.msk.f32.gmra.mrb[20].mxu0 %vm250_vm1, %v195_v49  ;;  %1252 = vmatmul.mubr.msk.f32.gmra.mrb[20].mxu1 %vm250_vm1, %v227_v50 }
  0x3c   : > { %1206 = vmatprep.mubr.msk.f32.mxu0 %vm250_vm1, %v196_v51  ;;  %1254 = vmatprep.mubr.msk.f32.mxu1 %vm250_vm1, %v228_v52 }
  0x3f   : > { %1207 = vmatmul.mubr.msk.f32.gmra.mrb[22].mxu0 %vm250_vm1, %v197_v53  ;;  %1255 = vmatmul.mubr.msk.f32.gmra.mrb[22].mxu1 %vm250_vm1, %v229_v54 }
  0x40   : > { %1209 = vmatprep.mubr.msk.f32.mxu0 %vm250_vm1, %v198_v55  ;;  %1257 = vmatprep.mubr.msk.f32.mxu1 %vm250_vm1, %v230_v56 }
  0x43   : > { %1210 = vmatmul.mubr.msk.f32.gmra.mrb[24].mxu0 %vm250_vm1, %v199_v57  ;;  %1258 = vmatmul.mubr.msk.f32.gmra.mrb[24].mxu1 %vm250_vm1, %v231_v58 }
  0x44   : > { %1212 = vmatprep.mubr.msk.f32.mxu0 %vm250_vm1, %v200_v59  ;;  %1260 = vmatprep.mubr.msk.f32.mxu1 %vm250_vm1, %v232_v60 }
  0x47   : > { %1213 = vmatmul.mubr.msk.f32.gmra.mrb[26].mxu0 %vm250_vm1, %v201_v61  ;;  %1261 = vmatmul.mubr.msk.f32.gmra.mrb[26].mxu1 %vm250_vm1, %v233_v62 }
  0x48   : > { %1215 = vmatprep.mubr.msk.f32.mxu0 %vm250_vm1, %v202_v63  ;;  %1263 = vmatprep.mubr.msk.f32.mxu1 %vm250_vm1, %v234_v0 }
  0x4b   : > { %1216 = vmatmul.mubr.msk.f32.gmra.mrb[28].mxu0 %vm250_vm1, %v203_v1  ;;  %1264 = vmatmul.mubr.msk.f32.gmra.mrb[28].mxu1 %vm250_vm1, %v235_v2 }
  0x4c   : > { %1218 = vmatprep.mubr.msk.f32.mxu0 %vm250_vm1, %v204_v3  ;;  %1266 = vmatprep.mubr.msk.f32.mxu1 %vm250_vm1, %v236_v4 }
  0x4f   : > { %1219 = vmatmul.mubr.msk.f32.gmra.mrb[30].mxu0 %vm250_vm1, %v205_v5  ;;  %1267 = vmatmul.mubr.msk.f32.gmra.mrb[30].mxu1 %vm250_vm1, %v237_v6 }
  0xe6   : > { %v1175_v8 = vpop.f32.mrb[0].mxu0  ;;  %v1223_v9 = vpop.f32.mrb[0].mxu1 }
  0xe7   : > { %v519_v10 = vadd.f32 %v1175_v8, %v1487_v7  ;;  %v679_v11 = vadd.f32 %v1223_v9, %v1487_v7  ;;  %v513_v12 = vpop.f32.mrb[1].mxu0  ;;  %v673_v13 = vpop.f32.mrb[1].mxu1 }
  0xe8   : > { %v514_v14 = vadd.f32 %v1487_v7, %v513_v12  ;;  %v674_v15 = vadd.f32 %v1487_v7, %v673_v13 }
  0xe9   : > { %v833_v16 = vmax.f32 %v519_v10, 0.0  ;;  %v865_v17 = vmax.f32 %v679_v11, 0.0 }
  0xea   : > { %v832_v18 = vmax.f32 %v514_v14, 0.0  ;;  %v864_v19 = vmax.f32 %v674_v15, 0.0  ;;  %v1178_v20 = vpop.f32.mrb[2].mxu0  ;;  %v1226_v21 = vpop.f32.mrb[2].mxu1 }
  0xeb   : > { %898 = vst.msk [vmem:[%s1496_s6 + $0x8] sm:$0xff] %vm896_vm2, %v833_v16  ;;  %930 = vst.msk [vmem:[%s1496_s6 + $0x108] sm:$0xff] %vm896_vm2, %v865_v17  ;;  %v529_v22 = vadd.f32 %v1178_v20, %v1487_v7  ;;  %v689_v23 = vadd.f32 %v1226_v21, %v1487_v7  ;;  %v523_v24 = vpop.f32.mrb[3].mxu0  ;;  %v683_v25 = vpop.f32.mrb[3].mxu1 }
  0xec   : > { %897 = vst.msk [vmem:[%s1496_s6] sm:$0xff] %vm896_vm2, %v832_v18  ;;  %929 = vst.msk [vmem:[%s1496_s6 + $0x100] sm:$0xff] %vm896_vm2, %v864_v19  ;;  %v524_v26 = vadd.f32 %v1487_v7, %v523_v24  ;;  %v684_v27 = vadd.f32 %v1487_v7, %v683_v25 }
  0xed   : > { %v835_v28 = vmax.f32 %v529_v22, 0.0  ;;  %v867_v29 = vmax.f32 %v689_v23, 0.0 }
  0xee   : > { %v834_v30 = vmax.f32 %v524_v26, 0.0  ;;  %v866_v31 = vmax.f32 %v684_v27, 0.0  ;;  %v1181_v32 = vpop.f32.mrb[4].mxu0  ;;  %v1229_v33 = vpop.f32.mrb[4].mxu1 }
  0xef   : > { %900 = vst.msk [vmem:[%s1496_s6 + $0x18] sm:$0xff] %vm896_vm2, %v835_v28  ;;  %932 = vst.msk [vmem:[%s1496_s6 + $0x118] sm:$0xff] %vm896_vm2, %v867_v29  ;;  %v539_v34 = vadd.f32 %v1181_v32, %v1487_v7  ;;  %v699_v35 = vadd.f32 %v1229_v33, %v1487_v7  ;;  %v533_v36 = vpop.f32.mrb[5].mxu0  ;;  %v693_v37 = vpop.f32.mrb[5].mxu1 }
  0xf0   : > { %899 = vst.msk [vmem:[%s1496_s6 + $0x10] sm:$0xff] %vm896_vm2, %v834_v30  ;;  %931 = vst.msk [vmem:[%s1496_s6 + $0x110] sm:$0xff] %vm896_vm2, %v866_v31  ;;  %v534_v38 = vadd.f32 %v1487_v7, %v533_v36  ;;  %v694_v39 = vadd.f32 %v1487_v7, %v693_v37 }
  0xf1   : > { %v837_v40 = vmax.f32 %v539_v34, 0.0  ;;  %v869_v41 = vmax.f32 %v699_v35, 0.0 }
  0xf2   : > { %v836_v42 = vmax.f32 %v534_v38, 0.0  ;;  %v868_v43 = vmax.f32 %v694_v39, 0.0  ;;  %v1184_v44 = vpop.f32.mrb[6].mxu0  ;;  %v1232_v45 = vpop.f32.mrb[6].mxu1 }
  0xf3   : > { %902 = vst.msk [vmem:[%s1496_s6 + $0x28] sm:$0xff] %vm896_vm2, %v837_v40  ;;  %934 = vst.msk [vmem:[%s1496_s6 + $0x128] sm:$0xff] %vm896_vm2, %v869_v41  ;;  %v549_v46 = vadd.f32 %v1184_v44, %v1487_v7  ;;  %v709_v47 = vadd.f32 %v1232_v45, %v1487_v7  ;;  %v543_v48 = vpop.f32.mrb[7].mxu0  ;;  %v703_v49 = vpop.f32.mrb[7].mxu1 }
  0xf4   : > { %901 = vst.msk [vmem:[%s1496_s6 + $0x20] sm:$0xff] %vm896_vm2, %v836_v42  ;;  %933 = vst.msk [vmem:[%s1496_s6 + $0x120] sm:$0xff] %vm896_vm2, %v868_v43  ;;  %v544_v50 = vadd.f32 %v1487_v7, %v543_v48  ;;  %v704_v51 = vadd.f32 %v1487_v7, %v703_v49 }
  0xf5   : > { %v839_v52 = vmax.f32 %v549_v46, 0.0  ;;  %v871_v53 = vmax.f32 %v709_v47, 0.0 }
  0xf6   : > { %v838_v54 = vmax.f32 %v544_v50, 0.0  ;;  %v870_v55 = vmax.f32 %v704_v51, 0.0  ;;  %v1187_v56 = vpop.f32.mrb[8].mxu0  ;;  %v1235_v57 = vpop.f32.mrb[8].mxu1 }
  0xf7   : > { %904 = vst.msk [vmem:[%s1496_s6 + $0x38] sm:$0xff] %vm896_vm2, %v839_v52  ;;  %936 = vst.msk [vmem:[%s1496_s6 + $0x138] sm:$0xff] %vm896_vm2, %v871_v53  ;;  %v559_v58 = vadd.f32 %v1187_v56, %v1487_v7  ;;  %v719_v59 = vadd.f32 %v1235_v57, %v1487_v7  ;;  %v553_v60 = vpop.f32.mrb[9].mxu0  ;;  %v713_v61 = vpop.f32.mrb[9].mxu1 }
  0xf8   : > { %903 = vst.msk [vmem:[%s1496_s6 + $0x30] sm:$0xff] %vm896_vm2, %v838_v54  ;;  %935 = vst.msk [vmem:[%s1496_s6 + $0x130] sm:$0xff] %vm896_vm2, %v870_v55  ;;  %v554_v62 = vadd.f32 %v1487_v7, %v553_v60  ;;  %v714_v63 = vadd.f32 %v1487_v7, %v713_v61 }
  0xf9   : > { %v841_v0 = vmax.f32 %v559_v58, 0.0  ;;  %v873_v1 = vmax.f32 %v719_v59, 0.0 }
  0xfa   : > { %v840_v2 = vmax.f32 %v554_v62, 0.0  ;;  %v872_v3 = vmax.f32 %v714_v63, 0.0  ;;  %v1190_v4 = vpop.f32.mrb[10].mxu0  ;;  %v1238_v5 = vpop.f32.mrb[10].mxu1 }
  0xfb   : > { %906 = vst.msk [vmem:[%s1496_s6 + $0x48] sm:$0xff] %vm896_vm2, %v841_v0  ;;  %938 = vst.msk [vmem:[%s1496_s6 + $0x148] sm:$0xff] %vm896_vm2, %v873_v1  ;;  %v569_v6 = vadd.f32 %v1190_v4, %v1487_v7  ;;  %v729_v8 = vadd.f32 %v1238_v5, %v1487_v7  ;;  %v563_v9 = vpop.f32.mrb[11].mxu0  ;;  %v723_v10 = vpop.f32.mrb[11].mxu1 }
  0xfc   : > { %905 = vst.msk [vmem:[%s1496_s6 + $0x40] sm:$0xff] %vm896_vm2, %v840_v2  ;;  %937 = vst.msk [vmem:[%s1496_s6 + $0x140] sm:$0xff] %vm896_vm2, %v872_v3  ;;  %v564_v11 = vadd.f32 %v1487_v7, %v563_v9  ;;  %v724_v12 = vadd.f32 %v1487_v7, %v723_v10 }
  0xfd   : > { %v843_v13 = vmax.f32 %v569_v6, 0.0  ;;  %v875_v14 = vmax.f32 %v729_v8, 0.0 }
  0xfe   : > { %v842_v15 = vmax.f32 %v564_v11, 0.0  ;;  %v874_v16 = vmax.f32 %v724_v12, 0.0  ;;  %v1193_v17 = vpop.f32.mrb[12].mxu0  ;;  %v1241_v18 = vpop.f32.mrb[12].mxu1 }
  0xff   : > { %908 = vst.msk [vmem:[%s1496_s6 + $0x58] sm:$0xff] %vm896_vm2, %v843_v13  ;;  %940 = vst.msk [vmem:[%s1496_s6 + $0x158] sm:$0xff] %vm896_vm2, %v875_v14  ;;  %v579_v19 = vadd.f32 %v1193_v17, %v1487_v7  ;;  %v739_v20 = vadd.f32 %v1241_v18, %v1487_v7  ;;  %v573_v21 = vpop.f32.mrb[13].mxu0  ;;  %v733_v22 = vpop.f32.mrb[13].mxu1 }
 0x100   : > { %907 = vst.msk [vmem:[%s1496_s6 + $0x50] sm:$0xff] %vm896_vm2, %v842_v15  ;;  %939 = vst.msk [vmem:[%s1496_s6 + $0x150] sm:$0xff] %vm896_vm2, %v874_v16  ;;  %v574_v23 = vadd.f32 %v1487_v7, %v573_v21  ;;  %v734_v24 = vadd.f32 %v1487_v7, %v733_v22 }
 0x101   : > { %v845_v25 = vmax.f32 %v579_v19, 0.0  ;;  %v877_v26 = vmax.f32 %v739_v20, 0.0 }
 0x102   : > { %v844_v27 = vmax.f32 %v574_v23, 0.0  ;;  %v876_v28 = vmax.f32 %v734_v24, 0.0  ;;  %v1196_v29 = vpop.f32.mrb[14].mxu0  ;;  %v1244_v30 = vpop.f32.mrb[14].mxu1 }
 0x103   : > { %910 = vst.msk [vmem:[%s1496_s6 + $0x68] sm:$0xff] %vm896_vm2, %v845_v25  ;;  %942 = vst.msk [vmem:[%s1496_s6 + $0x168] sm:$0xff] %vm896_vm2, %v877_v26  ;;  %v589_v31 = vadd.f32 %v1196_v29, %v1487_v7  ;;  %v749_v32 = vadd.f32 %v1244_v30, %v1487_v7  ;;  %v583_v33 = vpop.f32.mrb[15].mxu0  ;;  %v743_v34 = vpop.f32.mrb[15].mxu1 }
 0x104   : > { %909 = vst.msk [vmem:[%s1496_s6 + $0x60] sm:$0xff] %vm896_vm2, %v844_v27  ;;  %941 = vst.msk [vmem:[%s1496_s6 + $0x160] sm:$0xff] %vm896_vm2, %v876_v28  ;;  %v584_v35 = vadd.f32 %v1487_v7, %v583_v33  ;;  %v744_v36 = vadd.f32 %v1487_v7, %v743_v34 }
 0x105   : > { %v847_v37 = vmax.f32 %v589_v31, 0.0  ;;  %v879_v38 = vmax.f32 %v749_v32, 0.0 }
 0x106   : > { %v846_v39 = vmax.f32 %v584_v35, 0.0  ;;  %v878_v40 = vmax.f32 %v744_v36, 0.0  ;;  %v1199_v41 = vpop.f32.mrb[16].mxu0  ;;  %v1247_v42 = vpop.f32.mrb[16].mxu1 }
 0x107   : > { %912 = vst.msk [vmem:[%s1496_s6 + $0x78] sm:$0xff] %vm896_vm2, %v847_v37  ;;  %944 = vst.msk [vmem:[%s1496_s6 + $0x178] sm:$0xff] %vm896_vm2, %v879_v38  ;;  %v599_v43 = vadd.f32 %v1199_v41, %v1487_v7  ;;  %v759_v44 = vadd.f32 %v1247_v42, %v1487_v7  ;;  %v593_v45 = vpop.f32.mrb[17].mxu0  ;;  %v753_v46 = vpop.f32.mrb[17].mxu1 }
 0x108   : > { %911 = vst.msk [vmem:[%s1496_s6 + $0x70] sm:$0xff] %vm896_vm2, %v846_v39  ;;  %943 = vst.msk [vmem:[%s1496_s6 + $0x170] sm:$0xff] %vm896_vm2, %v878_v40  ;;  %v594_v47 = vadd.f32 %v1487_v7, %v593_v45  ;;  %v754_v48 = vadd.f32 %v1487_v7, %v753_v46 }
 0x109   : > { %v849_v49 = vmax.f32 %v599_v43, 0.0  ;;  %v881_v50 = vmax.f32 %v759_v44, 0.0 }
 0x10a   : > { %v848_v51 = vmax.f32 %v594_v47, 0.0  ;;  %v880_v52 = vmax.f32 %v754_v48, 0.0  ;;  %v1202_v53 = vpop.f32.mrb[18].mxu0  ;;  %v1250_v54 = vpop.f32.mrb[18].mxu1 }
 0x10b   : > { %914 = vst.msk [vmem:[%s1496_s6 + $0x88] sm:$0xff] %vm896_vm2, %v849_v49  ;;  %946 = vst.msk [vmem:[%s1496_s6 + $0x188] sm:$0xff] %vm896_vm2, %v881_v50  ;;  %v609_v55 = vadd.f32 %v1202_v53, %v1487_v7  ;;  %v769_v56 = vadd.f32 %v1250_v54, %v1487_v7  ;;  %v603_v57 = vpop.f32.mrb[19].mxu0  ;;  %v763_v58 = vpop.f32.mrb[19].mxu1 }
 0x10c   : > { %913 = vst.msk [vmem:[%s1496_s6 + $0x80] sm:$0xff] %vm896_vm2, %v848_v51  ;;  %945 = vst.msk [vmem:[%s1496_s6 + $0x180] sm:$0xff] %vm896_vm2, %v880_v52  ;;  %v604_v59 = vadd.f32 %v1487_v7, %v603_v57  ;;  %v764_v60 = vadd.f32 %v1487_v7, %v763_v58 }
 0x10d   : > { %v851_v61 = vmax.f32 %v609_v55, 0.0  ;;  %v883_v62 = vmax.f32 %v769_v56, 0.0 }
 0x10e   : > { %v850_v63 = vmax.f32 %v604_v59, 0.0  ;;  %v882_v0 = vmax.f32 %v764_v60, 0.0  ;;  %v1205_v1 = vpop.f32.mrb[20].mxu0  ;;  %v1253_v2 = vpop.f32.mrb[20].mxu1 }
 0x10f   : > { %916 = vst.msk [vmem:[%s1496_s6 + $0x98] sm:$0xff] %vm896_vm2, %v851_v61  ;;  %948 = vst.msk [vmem:[%s1496_s6 + $0x198] sm:$0xff] %vm896_vm2, %v883_v62  ;;  %v619_v3 = vadd.f32 %v1205_v1, %v1487_v7  ;;  %v779_v4 = vadd.f32 %v1253_v2, %v1487_v7  ;;  %v613_v5 = vpop.f32.mrb[21].mxu0  ;;  %v773_v6 = vpop.f32.mrb[21].mxu1 }
 0x110   : > { %915 = vst.msk [vmem:[%s1496_s6 + $0x90] sm:$0xff] %vm896_vm2, %v850_v63  ;;  %947 = vst.msk [vmem:[%s1496_s6 + $0x190] sm:$0xff] %vm896_vm2, %v882_v0  ;;  %v614_v8 = vadd.f32 %v1487_v7, %v613_v5  ;;  %v774_v9 = vadd.f32 %v1487_v7, %v773_v6 }
 0x111   : > { %v853_v10 = vmax.f32 %v619_v3, 0.0  ;;  %v885_v11 = vmax.f32 %v779_v4, 0.0 }
 0x112   : > { %v852_v12 = vmax.f32 %v614_v8, 0.0  ;;  %v884_v13 = vmax.f32 %v774_v9, 0.0  ;;  %v1208_v14 = vpop.f32.mrb[22].mxu0  ;;  %v1256_v15 = vpop.f32.mrb[22].mxu1 }
 0x113   : > { %918 = vst.msk [vmem:[%s1496_s6 + $0xa8] sm:$0xff] %vm896_vm2, %v853_v10  ;;  %950 = vst.msk [vmem:[%s1496_s6 + $0x1a8] sm:$0xff] %vm896_vm2, %v885_v11  ;;  %v629_v16 = vadd.f32 %v1208_v14, %v1487_v7  ;;  %v789_v17 = vadd.f32 %v1256_v15, %v1487_v7  ;;  %v623_v18 = vpop.f32.mrb[23].mxu0  ;;  %v783_v19 = vpop.f32.mrb[23].mxu1 }
 0x114   : > { %917 = vst.msk [vmem:[%s1496_s6 + $0xa0] sm:$0xff] %vm896_vm2, %v852_v12  ;;  %949 = vst.msk [vmem:[%s1496_s6 + $0x1a0] sm:$0xff] %vm896_vm2, %v884_v13  ;;  %v624_v20 = vadd.f32 %v1487_v7, %v623_v18  ;;  %v784_v21 = vadd.f32 %v1487_v7, %v783_v19 }
 0x115   : > { %v855_v22 = vmax.f32 %v629_v16, 0.0  ;;  %v887_v23 = vmax.f32 %v789_v17, 0.0 }
 0x116   : > { %v854_v24 = vmax.f32 %v624_v20, 0.0  ;;  %v886_v25 = vmax.f32 %v784_v21, 0.0  ;;  %v1211_v26 = vpop.f32.mrb[24].mxu0  ;;  %v1259_v27 = vpop.f32.mrb[24].mxu1 }
 0x117   : > { %920 = vst.msk [vmem:[%s1496_s6 + $0xb8] sm:$0xff] %vm896_vm2, %v855_v22  ;;  %952 = vst.msk [vmem:[%s1496_s6 + $0x1b8] sm:$0xff] %vm896_vm2, %v887_v23  ;;  %v639_v28 = vadd.f32 %v1211_v26, %v1487_v7  ;;  %v799_v29 = vadd.f32 %v1259_v27, %v1487_v7  ;;  %v633_v30 = vpop.f32.mrb[25].mxu0  ;;  %v793_v31 = vpop.f32.mrb[25].mxu1 }
 0x118   : > { %919 = vst.msk [vmem:[%s1496_s6 + $0xb0] sm:$0xff] %vm896_vm2, %v854_v24  ;;  %951 = vst.msk [vmem:[%s1496_s6 + $0x1b0] sm:$0xff] %vm896_vm2, %v886_v25  ;;  %v634_v32 = vadd.f32 %v1487_v7, %v633_v30  ;;  %v794_v33 = vadd.f32 %v1487_v7, %v793_v31 }
 0x119   : > { %v857_v34 = vmax.f32 %v639_v28, 0.0  ;;  %v889_v35 = vmax.f32 %v799_v29, 0.0 }
 0x11a   : > { %v856_v36 = vmax.f32 %v634_v32, 0.0  ;;  %v888_v37 = vmax.f32 %v794_v33, 0.0  ;;  %v1214_v38 = vpop.f32.mrb[26].mxu0  ;;  %v1262_v39 = vpop.f32.mrb[26].mxu1 }
 0x11b   : > { %922 = vst.msk [vmem:[%s1496_s6 + $0xc8] sm:$0xff] %vm896_vm2, %v857_v34  ;;  %954 = vst.msk [vmem:[%s1496_s6 + $0x1c8] sm:$0xff] %vm896_vm2, %v889_v35  ;;  %v649_v40 = vadd.f32 %v1214_v38, %v1487_v7  ;;  %v809_v41 = vadd.f32 %v1262_v39, %v1487_v7  ;;  %v643_v42 = vpop.f32.mrb[27].mxu0  ;;  %v803_v43 = vpop.f32.mrb[27].mxu1 }
 0x11c   : > { %921 = vst.msk [vmem:[%s1496_s6 + $0xc0] sm:$0xff] %vm896_vm2, %v856_v36  ;;  %953 = vst.msk [vmem:[%s1496_s6 + $0x1c0] sm:$0xff] %vm896_vm2, %v888_v37  ;;  %v644_v44 = vadd.f32 %v1487_v7, %v643_v42  ;;  %v804_v45 = vadd.f32 %v1487_v7, %v803_v43 }
 0x11d   : > { %v859_v46 = vmax.f32 %v649_v40, 0.0  ;;  %v891_v47 = vmax.f32 %v809_v41, 0.0 }
 0x11e   : > { %v858_v48 = vmax.f32 %v644_v44, 0.0  ;;  %v890_v49 = vmax.f32 %v804_v45, 0.0  ;;  %v1217_v50 = vpop.f32.mrb[28].mxu0  ;;  %v1265_v51 = vpop.f32.mrb[28].mxu1 }
 0x11f   : > { %924 = vst.msk [vmem:[%s1496_s6 + $0xd8] sm:$0xff] %vm896_vm2, %v859_v46  ;;  %956 = vst.msk [vmem:[%s1496_s6 + $0x1d8] sm:$0xff] %vm896_vm2, %v891_v47  ;;  %v659_v52 = vadd.f32 %v1217_v50, %v1487_v7  ;;  %v819_v53 = vadd.f32 %v1265_v51, %v1487_v7  ;;  %v653_v54 = vpop.f32.mrb[29].mxu0  ;;  %v813_v55 = vpop.f32.mrb[29].mxu1 }
 0x120   : > { %923 = vst.msk [vmem:[%s1496_s6 + $0xd0] sm:$0xff] %vm896_vm2, %v858_v48  ;;  %955 = vst.msk [vmem:[%s1496_s6 + $0x1d0] sm:$0xff] %vm896_vm2, %v890_v49  ;;  %v654_v56 = vadd.f32 %v1487_v7, %v653_v54  ;;  %v814_v57 = vadd.f32 %v1487_v7, %v813_v55 }
 0x121   : > { %v861_v58 = vmax.f32 %v659_v52, 0.0  ;;  %v893_v59 = vmax.f32 %v819_v53, 0.0 }
 0x122   : > { %v860_v60 = vmax.f32 %v654_v56, 0.0  ;;  %v892_v61 = vmax.f32 %v814_v57, 0.0  ;;  %v1220_v62 = vpop.f32.mrb[30].mxu0  ;;  %v1268_v63 = vpop.f32.mrb[30].mxu1 }
 0x123   : > { %926 = vst.msk [vmem:[%s1496_s6 + $0xe8] sm:$0xff] %vm896_vm2, %v861_v58  ;;  %958 = vst.msk [vmem:[%s1496_s6 + $0x1e8] sm:$0xff] %vm896_vm2, %v893_v59  ;;  %v669_v0 = vadd.f32 %v1220_v62, %v1487_v7  ;;  %v829_v1 = vadd.f32 %v1268_v63, %v1487_v7  ;;  %v663_v2 = vpop.f32.mrb[31].mxu0  ;;  %v823_v3 = vpop.f32.mrb[31].mxu1 }
 0x124   : > { %925 = vst.msk [vmem:[%s1496_s6 + $0xe0] sm:$0xff] %vm896_vm2, %v860_v60  ;;  %957 = vst.msk [vmem:[%s1496_s6 + $0x1e0] sm:$0xff] %vm896_vm2, %v892_v61  ;;  %v664_v4 = vadd.f32 %v1487_v7, %v663_v2  ;;  %v824_v5 = vadd.f32 %v1487_v7, %v823_v3 }
 0x125   : > { %v863_v6 = vmax.f32 %v669_v0, 0.0  ;;  %v895_v8 = vmax.f32 %v829_v1, 0.0 }
 0x126   : > { %v862_v9 = vmax.f32 %v664_v4, 0.0  ;;  %v894_v10 = vmax.f32 %v824_v5, 0.0 }
 0x127   : > { %928 = vst.msk [vmem:[%s1496_s6 + $0xf8] sm:$0xff] %vm896_vm2, %v863_v6  ;;  %960 = vst.msk [vmem:[%s1496_s6 + $0x1f8] sm:$0xff] %vm896_vm2, %v895_v8 }
 0x128   : > { %927 = vst.msk [vmem:[%s1496_s6 + $0xf0] sm:$0xff] %vm896_vm2, %v862_v9  ;;  %959 = vst.msk [vmem:[%s1496_s6 + $0x1f0] sm:$0xff] %vm896_vm2, %v894_v10 }
 0x129 PF: > { %s13_s12 = sadd.s32 1, %s1297_s12  }
 0x12a   : > { %p10_p4 = scmp.ge.s32.totalorder %s13_s12, 6  }
 0x12c   :  { %12 = sbr.rel (!%p10_p4) target bundleno = 1 (0x1), region = 62 }

</bundles_post_ra>
